<compile_context>
chip_gen: v5e
topology: v5e:2x2
jax: 0.10.0
libtpu: 0.0.40
codegen_flags: <defaults>
</compile_context>

<pallas_src>
import functools

import jax
import jax.numpy as jnp
from jax import lax
from jax.experimental import pallas as pl
from jax.experimental.pallas import tpu as pltpu

_LANE = 128


def _round_up(n, m):
    return ((n + m - 1) // m) * m


# ---------------------------------------------------------------------------
# Kernel
# ---------------------------------------------------------------------------
def _mlp_kernel(x_ref,
                w0_ref, b0_ref,
                w1_ref, b1_ref,
                w2_ref, b2_ref,
                w3_ref, b3_ref,
                w4_ref, b4_ref,
                o_ref, *, chunk):
    """Full 5-layer MLP on one (TB, in_dim) batch tile.

    bf16 x bf16 MXU matmuls with f32 accumulation; bias-add / ReLU in f32.
    The batch tile is processed in `chunk`-row sub-tiles so intermediates stay
    register-resident instead of spilling to VMEM.
    """
    layers = ((w0_ref, b0_ref, True),
              (w1_ref, b1_ref, True),
              (w2_ref, b2_ref, True),
              (w3_ref, b3_ref, True),
              (w4_ref, b4_ref, False))

    def chain(x_f32):
        h = x_f32.astype(jnp.bfloat16)          # in-kernel cast
        for w_ref, b_ref, relu in layers:
            acc = jnp.dot(h, w_ref[...], preferred_element_type=jnp.float32)
            acc = acc + b_ref[...]
            if relu:
                h = jnp.maximum(acc, 0.0).astype(jnp.bfloat16)
            else:
                h = acc                          # final logits, f32
        return h

    tb = x_ref.shape[0]
    n_chunks = tb // chunk
    if n_chunks <= 1:
        o_ref[...] = chain(x_ref[...]).astype(o_ref.dtype)
    else:
        def body(c, carry):
            start = pl.multiple_of(c * chunk, chunk)
            out = chain(x_ref[pl.ds(start, chunk), :])
            o_ref[pl.ds(start, chunk), :] = out.astype(o_ref.dtype)
            return carry

        lax.fori_loop(0, n_chunks, body, 0, unroll=True)


# ---------------------------------------------------------------------------
# One-time parameter prep (hoisted out of the forward path)
# ---------------------------------------------------------------------------
def prepare_params(params, *, lane=_LANE):
    """Pad every layer's output width up to a multiple of 128 lanes, pad the
    next layer's input rows to match, and cast W->bf16 / b->f32 once.

    Zero-padded activation lanes stay exactly zero through bias(0)+ReLU, and
    the matching zero rows of the next weight contribute nothing, so the math
    is unchanged. Returns a list of (W_bf16 (in,out_pad), b_f32 (1,out_pad))."""
    prepped = []
    prev_out_pad = None
    for i, (w, b) in enumerate(params):
        din, dout = w.shape
        din_pad = din if i == 0 else prev_out_pad
        dout_pad = max(lane, _round_up(dout, lane))
        w_p = jnp.zeros((din_pad, dout_pad), jnp.float32).at[:din, :dout].set(w)
        b_p = jnp.zeros((1, dout_pad), jnp.float32).at[:, :dout].set(
            jnp.reshape(b, (1, -1)))
        prepped.append((w_p.astype(jnp.bfloat16), b_p))
        prev_out_pad = dout_pad
    return prepped


# ---------------------------------------------------------------------------
# Forward wrapper
# ---------------------------------------------------------------------------
def mlp_forward(x, prepped_params, out_dim, *, tb=None):
    """x: (B, in_dim) f32. prepped_params: output of prepare_params."""
    B, in_dim = x.shape
    assert prepped_params[0][0].shape[0] == in_dim
    out_pad = prepped_params[-1][0].shape[1]

    # Batch tile: chosen purely to amortize per-grid-step overhead and keep
    # VMEM small (M feeds the MXU 8 rows/push; TB != MXU width requirement).
    if tb is None:
        if B <= 128:
            tb = _round_up(max(B, 8), 8)
        else:
            # >= 2 grid steps so v7x's two TensorCores both get work; multiple
            # of 128 so the in-kernel sub-tiling divides evenly; cap at 512.
            tb = min(512, _round_up(-(-B // 2), 128))
    chunk = 128 if (tb % 128 == 0 and tb > 128) else tb

    b_pad = _round_up(B, tb)
    if b_pad != B:
        x = jnp.pad(x, ((0, b_pad - B), (0, 0)))

    flat_inputs = [x]
    in_specs = [pl.BlockSpec((tb, in_dim), lambda i: (i, 0))]
    for w, b in prepped_params:
        flat_inputs.append(w)
        in_specs.append(pl.BlockSpec(w.shape, lambda i: (0, 0)))  # VMEM-resident
        flat_inputs.append(b)
        in_specs.append(pl.BlockSpec(b.shape, lambda i: (0, 0)))  # VMEM-resident

    param_bytes = sum(w.size * w.dtype.itemsize + b.size * b.dtype.itemsize
                      for w, b in prepped_params)
    cost = pl.CostEstimate(
        flops=2 * b_pad * sum(w.shape[0] * w.shape[1] for w, _ in prepped_params),
        transcendentals=0,
        bytes_accessed=(x.size * x.dtype.itemsize + param_bytes
                        + b_pad * out_pad * 2),
    )

    out = pl.pallas_call(
        functools.partial(_mlp_kernel, chunk=chunk),
        out_shape=jax.ShapeDtypeStruct((b_pad, out_pad), jnp.bfloat16),
        grid=(b_pad // tb,),
        in_specs=in_specs,
        out_specs=pl.BlockSpec((tb, out_pad), lambda i: (i, 0)),
        compiler_params=pltpu.CompilerParams(
            dimension_semantics=("parallel",),   # megacore sharding on v7x
            vmem_limit_bytes=16 << 20,
        ),
        cost_estimate=cost,
    )(*flat_inputs)

    return out[:B, :out_dim].astype(jnp.float32)


# ---------------------------------------------------------------------------
# Reference init / forward (PyTorch-style)
# ---------------------------------------------------------------------------
def init_params(key, input_dim, output_dim):
    """Deterministic init matching PyTorch Linear shapes (weights stored (in, out))."""
    dims = [(input_dim, 128), (128, 256), (256, 128), (128, 64), (64, output_dim)]
    params = []
    for i, (din, dout) in enumerate(dims):
        kw, kb = jax.random.split(jax.random.fold_in(key, i))
        bound = 1.0 / (din ** 0.5)  # PyTorch default uniform(-1/sqrt(in), 1/sqrt(in))
        w = jax.random.uniform(kw, (din, dout), jnp.float32, -bound, bound)
        b = jax.random.uniform(kb, (1, dout), jnp.float32, -bound, bound)
        params.append((w, b))
    return params


def reference_forward_f32(x, params):
    h = x
    for i, (w, b) in enumerate(params):
        h = h @ w + b
        if i < len(params) - 1:
            h = jnp.maximum(h, 0.0)
    return h


def reference_forward_bf16(x, params):
    """Mirrors the kernel's bf16-compute / f32-accumulate numerics."""
    h = x.astype(jnp.bfloat16)
    for i, (w, b) in enumerate(params):
        acc = jnp.dot(h, w.astype(jnp.bfloat16),
                      preferred_element_type=jnp.float32) + b
        if i < len(params) - 1:
            h = jnp.maximum(acc, 0.0).astype(jnp.bfloat16)
        else:
            h = acc
    return h


if __name__ == "__main__":
    key = jax.random.PRNGKey(0)
    input_dim, output_dim = 4, 3

    params = init_params(key, input_dim, output_dim)
    prepped = prepare_params(params)   # one-time prep, outside the hot path

    def check(batch):
        x = jax.random.normal(jax.random.fold_in(key, 100 + batch),
                              (batch, input_dim), jnp.float32)
        out = jax.block_until_ready(mlp_forward(x, prepped, output_dim))
        assert out.shape == (batch, output_dim)
        ref_bf16 = reference_forward_bf16(x, params)
        ref_f32 = reference_forward_f32(x, params)
        assert jnp.allclose(out, ref_bf16, atol=2e-2, rtol=2e-2), \
            f"mismatch vs bf16 reference (batch={batch})"
        assert jnp.allclose(out, ref_f32, atol=5e-2, rtol=5e-2), \
            f"mismatch vs f32 reference (batch={batch})"

    check(8)      # tiny batch: single grid step, no sub-tiling
    check(384)    # larger batch: padded to 2 grid steps, 128-row sub-tiling

    print("KERNEL_OK")
</pallas_src>

<mosaic_0001>
module attributes {stable_mosaic.version = 11 : i64} {
  func.func @_mlp_kernel(%arg0: i32, %arg1: memref<8x4xf32, #tpu.memory_space<vmem>>, %arg2: memref<4x128xbf16, #tpu.memory_space<vmem>>, %arg3: memref<1x128xf32, #tpu.memory_space<vmem>>, %arg4: memref<128x256xbf16, #tpu.memory_space<vmem>>, %arg5: memref<1x256xf32, #tpu.memory_space<vmem>>, %arg6: memref<256x128xbf16, #tpu.memory_space<vmem>>, %arg7: memref<1x128xf32, #tpu.memory_space<vmem>>, %arg8: memref<128x128xbf16, #tpu.memory_space<vmem>>, %arg9: memref<1x128xf32, #tpu.memory_space<vmem>>, %arg10: memref<128x128xbf16, #tpu.memory_space<vmem>>, %arg11: memref<1x128xf32, #tpu.memory_space<vmem>>, %arg12: memref<8x128xbf16, #tpu.memory_space<vmem>>) attributes {dimension_semantics = [#tpu.dimension_semantics<parallel>], iteration_bounds = array<i64: 1>, scalar_prefetch = 0 : i64, scratch_operands = 0 : i64, tpu.core_type = #tpu.core_type<tc>, window_params = [{transform_indices = @transform_0, window_bounds = array<i64: 8, 4>}, {pipeline_mode = #tpu.pipeline_mode<synchronous>, transform_indices = @transform_1, window_bounds = array<i64: 4, 128>}, {pipeline_mode = #tpu.pipeline_mode<synchronous>, transform_indices = @transform_2, window_bounds = array<i64: 1, 128>}, {pipeline_mode = #tpu.pipeline_mode<synchronous>, transform_indices = @transform_3, window_bounds = array<i64: 128, 256>}, {pipeline_mode = #tpu.pipeline_mode<synchronous>, transform_indices = @transform_4, window_bounds = array<i64: 1, 256>}, {pipeline_mode = #tpu.pipeline_mode<synchronous>, transform_indices = @transform_5, window_bounds = array<i64: 256, 128>}, {pipeline_mode = #tpu.pipeline_mode<synchronous>, transform_indices = @transform_6, window_bounds = array<i64: 1, 128>}, {pipeline_mode = #tpu.pipeline_mode<synchronous>, transform_indices = @transform_7, window_bounds = array<i64: 128, 128>}, {pipeline_mode = #tpu.pipeline_mode<synchronous>, transform_indices = @transform_8, window_bounds = array<i64: 1, 128>}, {pipeline_mode = #tpu.pipeline_mode<synchronous>, transform_indices = @transform_9, window_bounds = array<i64: 128, 128>}, {pipeline_mode = #tpu.pipeline_mode<synchronous>, transform_indices = @transform_10, window_bounds = array<i64: 1, 128>}, {transform_indices = @transform_11, window_bounds = array<i64: 8, 128>}]} {
    %c0 = arith.constant 0 : index
    %c0_0 = arith.constant 0 : index
    %0 = vector.load %arg1[%c0, %c0_0] : memref<8x4xf32, #tpu.memory_space<vmem>>, vector<8x4xf32>
    %1 = arith.truncf %0 : vector<8x4xf32> to vector<8x4xbf16>
    %c0_1 = arith.constant 0 : index
    %c0_2 = arith.constant 0 : index
    %2 = vector.load %arg2[%c0_1, %c0_2] : memref<4x128xbf16, #tpu.memory_space<vmem>>, vector<4x128xbf16>
    %cst = arith.constant dense<0.000000e+00> : vector<8x128xf32>
    %3 = tpu.matmul %1, %2, %cst {dimension_numbers = #tpu.dot_dimension_numbers<[1], [0], [0], [1], [0, 0, 1, 1], [], []>} : vector<8x4xbf16>, vector<4x128xbf16>, vector<8x128xf32> -> vector<8x128xf32>
    %c0_3 = arith.constant 0 : index
    %c0_4 = arith.constant 0 : index
    %4 = vector.load %arg3[%c0_3, %c0_4] : memref<1x128xf32, #tpu.memory_space<vmem>>, vector<1x128xf32>
    %5 = vector.broadcast %4 : vector<1x128xf32> to vector<8x128xf32>
    %6 = arith.addf %3, %5 : vector<8x128xf32>
    %cst_5 = arith.constant 0.000000e+00 : f32
    %7 = vector.broadcast %cst_5 : f32 to vector<8x128xf32>
    %8 = arith.maximumf %6, %7 : vector<8x128xf32>
    %9 = arith.truncf %8 : vector<8x128xf32> to vector<8x128xbf16>
    %c0_6 = arith.constant 0 : index
    %c0_7 = arith.constant 0 : index
    %10 = vector.load %arg4[%c0_6, %c0_7] : memref<128x256xbf16, #tpu.memory_space<vmem>>, vector<128x256xbf16>
    %cst_8 = arith.constant dense<0.000000e+00> : vector<8x256xf32>
    %11 = tpu.matmul %9, %10, %cst_8 {dimension_numbers = #tpu.dot_dimension_numbers<[1], [0], [0], [1], [0, 0, 1, 1], [], []>} : vector<8x128xbf16>, vector<128x256xbf16>, vector<8x256xf32> -> vector<8x256xf32>
    %c0_9 = arith.constant 0 : index
    %c0_10 = arith.constant 0 : index
    %12 = vector.load %arg5[%c0_9, %c0_10] : memref<1x256xf32, #tpu.memory_space<vmem>>, vector<1x256xf32>
    %13 = vector.broadcast %12 : vector<1x256xf32> to vector<8x256xf32>
    %14 = arith.addf %11, %13 : vector<8x256xf32>
    %cst_11 = arith.constant 0.000000e+00 : f32
    %15 = vector.broadcast %cst_11 : f32 to vector<8x256xf32>
    %16 = arith.maximumf %14, %15 : vector<8x256xf32>
    %17 = arith.truncf %16 : vector<8x256xf32> to vector<8x256xbf16>
    %c0_12 = arith.constant 0 : index
    %c0_13 = arith.constant 0 : index
    %18 = vector.load %arg6[%c0_12, %c0_13] : memref<256x128xbf16, #tpu.memory_space<vmem>>, vector<256x128xbf16>
    %cst_14 = arith.constant dense<0.000000e+00> : vector<8x128xf32>
    %19 = tpu.matmul %17, %18, %cst_14 {dimension_numbers = #tpu.dot_dimension_numbers<[1], [0], [0], [1], [0, 0, 1, 1], [], []>} : vector<8x256xbf16>, vector<256x128xbf16>, vector<8x128xf32> -> vector<8x128xf32>
    %c0_15 = arith.constant 0 : index
    %c0_16 = arith.constant 0 : index
    %20 = vector.load %arg7[%c0_15, %c0_16] : memref<1x128xf32, #tpu.memory_space<vmem>>, vector<1x128xf32>
    %21 = vector.broadcast %20 : vector<1x128xf32> to vector<8x128xf32>
    %22 = arith.addf %19, %21 : vector<8x128xf32>
    %cst_17 = arith.constant 0.000000e+00 : f32
    %23 = vector.broadcast %cst_17 : f32 to vector<8x128xf32>
    %24 = arith.maximumf %22, %23 : vector<8x128xf32>
    %25 = arith.truncf %24 : vector<8x128xf32> to vector<8x128xbf16>
    %c0_18 = arith.constant 0 : index
    %c0_19 = arith.constant 0 : index
    %26 = vector.load %arg8[%c0_18, %c0_19] : memref<128x128xbf16, #tpu.memory_space<vmem>>, vector<128x128xbf16>
    %cst_20 = arith.constant dense<0.000000e+00> : vector<8x128xf32>
    %27 = tpu.matmul %25, %26, %cst_20 {dimension_numbers = #tpu.dot_dimension_numbers<[1], [0], [0], [1], [0, 0, 1, 1], [], []>} : vector<8x128xbf16>, vector<128x128xbf16>, vector<8x128xf32> -> vector<8x128xf32>
    %c0_21 = arith.constant 0 : index
    %c0_22 = arith.constant 0 : index
    %28 = vector.load %arg9[%c0_21, %c0_22] : memref<1x128xf32, #tpu.memory_space<vmem>>, vector<1x128xf32>
    %29 = vector.broadcast %28 : vector<1x128xf32> to vector<8x128xf32>
    %30 = arith.addf %27, %29 : vector<8x128xf32>
    %cst_23 = arith.constant 0.000000e+00 : f32
    %31 = vector.broadcast %cst_23 : f32 to vector<8x128xf32>
    %32 = arith.maximumf %30, %31 : vector<8x128xf32>
    %33 = arith.truncf %32 : vector<8x128xf32> to vector<8x128xbf16>
    %c0_24 = arith.constant 0 : index
    %c0_25 = arith.constant 0 : index
    %34 = vector.load %arg10[%c0_24, %c0_25] : memref<128x128xbf16, #tpu.memory_space<vmem>>, vector<128x128xbf16>
    %cst_26 = arith.constant dense<0.000000e+00> : vector<8x128xf32>
    %35 = tpu.matmul %33, %34, %cst_26 {dimension_numbers = #tpu.dot_dimension_numbers<[1], [0], [0], [1], [0, 0, 1, 1], [], []>} : vector<8x128xbf16>, vector<128x128xbf16>, vector<8x128xf32> -> vector<8x128xf32>
    %c0_27 = arith.constant 0 : index
    %c0_28 = arith.constant 0 : index
    %36 = vector.load %arg11[%c0_27, %c0_28] : memref<1x128xf32, #tpu.memory_space<vmem>>, vector<1x128xf32>
    %37 = vector.broadcast %36 : vector<1x128xf32> to vector<8x128xf32>
    %38 = arith.addf %35, %37 : vector<8x128xf32>
    %39 = arith.truncf %38 : vector<8x128xf32> to vector<8x128xbf16>
    %c0_29 = arith.constant 0 : index
    %c0_30 = arith.constant 0 : index
    %40 = vector.load %arg12[%c0_29, %c0_30] : memref<8x128xbf16, #tpu.memory_space<vmem>>, vector<8x128xbf16>
    tpu.vector_store %arg12[%c0_29, %c0_30], %39 {strides = array<i32>} : memref<8x128xbf16, #tpu.memory_space<vmem>>, vector<8x128xbf16>,
    return
  }
  func.func @transform_0(%arg0: i32) -> (i32, i32) {
    %c0_i32 = arith.constant 0 : i32
    %c0_i32_0 = arith.constant 0 : i32
    return %arg0, %c0_i32 : i32, i32
  }
  func.func @transform_1(%arg0: i32) -> (i32, i32) {
    %c0_i32 = arith.constant 0 : i32
    %c0_i32_0 = arith.constant 0 : i32
    %c0_i32_1 = arith.constant 0 : i32
    return %c0_i32, %c0_i32_0 : i32, i32
  }
  func.func @transform_2(%arg0: i32) -> (i32, i32) {
    %c0_i32 = arith.constant 0 : i32
    %c0_i32_0 = arith.constant 0 : i32
    %c0_i32_1 = arith.constant 0 : i32
    return %c0_i32, %c0_i32_0 : i32, i32
  }
  func.func @transform_3(%arg0: i32) -> (i32, i32) {
    %c0_i32 = arith.constant 0 : i32
    %c0_i32_0 = arith.constant 0 : i32
    %c0_i32_1 = arith.constant 0 : i32
    return %c0_i32, %c0_i32_0 : i32, i32
  }
  func.func @transform_4(%arg0: i32) -> (i32, i32) {
    %c0_i32 = arith.constant 0 : i32
    %c0_i32_0 = arith.constant 0 : i32
    %c0_i32_1 = arith.constant 0 : i32
    return %c0_i32, %c0_i32_0 : i32, i32
  }
  func.func @transform_5(%arg0: i32) -> (i32, i32) {
    %c0_i32 = arith.constant 0 : i32
    %c0_i32_0 = arith.constant 0 : i32
    %c0_i32_1 = arith.constant 0 : i32
    return %c0_i32, %c0_i32_0 : i32, i32
  }
  func.func @transform_6(%arg0: i32) -> (i32, i32) {
    %c0_i32 = arith.constant 0 : i32
    %c0_i32_0 = arith.constant 0 : i32
    %c0_i32_1 = arith.constant 0 : i32
    return %c0_i32, %c0_i32_0 : i32, i32
  }
  func.func @transform_7(%arg0: i32) -> (i32, i32) {
    %c0_i32 = arith.constant 0 : i32
    %c0_i32_0 = arith.constant 0 : i32
    %c0_i32_1 = arith.constant 0 : i32
    return %c0_i32, %c0_i32_0 : i32, i32
  }
  func.func @transform_8(%arg0: i32) -> (i32, i32) {
    %c0_i32 = arith.constant 0 : i32
    %c0_i32_0 = arith.constant 0 : i32
    %c0_i32_1 = arith.constant 0 : i32
    return %c0_i32, %c0_i32_0 : i32, i32
  }
  func.func @transform_9(%arg0: i32) -> (i32, i32) {
    %c0_i32 = arith.constant 0 : i32
    %c0_i32_0 = arith.constant 0 : i32
    %c0_i32_1 = arith.constant 0 : i32
    return %c0_i32, %c0_i32_0 : i32, i32
  }
  func.func @transform_10(%arg0: i32) -> (i32, i32) {
    %c0_i32 = arith.constant 0 : i32
    %c0_i32_0 = arith.constant 0 : i32
    %c0_i32_1 = arith.constant 0 : i32
    return %c0_i32, %c0_i32_0 : i32, i32
  }
  func.func @transform_11(%arg0: i32) -> (i32, i32) {
    %c0_i32 = arith.constant 0 : i32
    %c0_i32_0 = arith.constant 0 : i32
    return %arg0, %c0_i32 : i32, i32
  }
}

</mosaic_0001>

<bundles_post_ra>
// kernel: tpu_custom_call.1
= control target key start
LH: loop header
LB: loop body
LE: loop exit
PB: predicated region body
PF: predicated region fallthrough
CT: control target
= control target key end

     0   :  { %16 = vsyncpa [#allocation3], 0  ;;  %s1097_s0 = inlined_call_operand.vmem [shape: f32[8,4], index: 0, kind: input, shape index: {}]   ;;  %s1098_s1 = inlined_call_operand.vmem [shape: bf16[4,128], index: 1, kind: input, shape index: {}]   ;;  %s1099_s2 = inlined_call_operand.vmem [shape: f32[1,128], index: 2, kind: input, shape index: {}]   ;;  %s1100_s3 = inlined_call_operand.hbm [shape: bf16[128,256], index: 3, kind: input, shape index: {}]   ;;  %s1101_s4 = inlined_call_operand.vmem [shape: f32[1,256], index: 4, kind: input, shape index: {}]   ;;  %s1102_s5 = inlined_call_operand.hbm [shape: bf16[256,128], index: 5, kind: input, shape index: {}]   ;;  %s1103_s6 = inlined_call_operand.vmem [shape: f32[1,128], index: 6, kind: input, shape index: {}]   ;;  %s1104_s7 = inlined_call_operand.hbm [shape: bf16[128,128], index: 7, kind: input, shape index: {}]   ;;  %s1105_s8 = inlined_call_operand.vmem [shape: f32[1,128], index: 8, kind: input, shape index: {}]   ;;  %s1106_s9 = inlined_call_operand.hbm [shape: bf16[128,128], index: 9, kind: input, shape index: {}]   ;;  %s1107_s10 = inlined_call_operand.vmem [shape: f32[1,128], index: 10, kind: input, shape index: {}]   ;;  %s1108_s11 = inlined_call_operand.hbm [shape: bf16[8,128], index: 11, kind: output, shape index: {}]  }
   0x1   :  { %17 = vsyncpa [#allocation6], 0 }
   0x2   :  { %18 = vsyncpa [#allocation9], 0  ;;  %s45_s19 = sshll.u32 %s1102_s5, 4  ;;  %s46_s19 = int_to_ptr.hbm [resolvable:$true] %s45_s19 }
   0x3   :  { %19 = vsyncpa [#allocation4], 0  ;;  %s992_s20 = smov [#allocation5]   ;;  %s30_s24 = sshll.u32 %s1100_s3, 4  ;;  %s31_s24 = int_to_ptr.hbm [resolvable:$true] %s30_s24 }
   0x4   :  { %s47_s21 = sshll.u32 %s992_s20, 4  ;;  %s993_s25 = smov 64   ;;  %s48_s21 = int_to_ptr.vmem [resolvable:$true] %s47_s21 }
   0x5   :  { %s994_s26 = smov 4   ;;  %s995_s27 = smov [#allocation2]  }
   0x6   :  { %53 = dma.hbm_to_vmem [thread:$0]  %s46_s19, 2048, %s48_s21, [#allocation6], %s993_s25, %s993_s25, %s994_s26  }
   0x7   :  { %s32_s28 = sshll.u32 %s995_s27, 4  ;;  %s996_s29 = smov 128   ;;  %s33_s28 = int_to_ptr.vmem [resolvable:$true] %s32_s28 }
   0x8   :  { %s997_s30 = smov 8   ;;  %s60_s13 = sshll.u32 %s1104_s7, 4  ;;  %s61_s13 = int_to_ptr.hbm [resolvable:$true] %s60_s13 }
   0x9   :  { %38 = dma.hbm_to_vmem [thread:$0]  %s31_s24, 2048, %s33_s28, [#allocation3], %s996_s29, %s996_s29, %s997_s30  }
   0xa   :  { %s998_s14 = smov [#allocation7]   ;;  %s75_s17 = sshll.u32 %s1106_s9, 4  ;;  %s76_s17 = int_to_ptr.hbm [resolvable:$true] %s75_s17 }
   0xb   :  { %s62_s15 = sshll.u32 %s998_s14, 4  ;;  %s999_s18 = smov [#allocation8]   ;;  %s63_s15 = int_to_ptr.vmem [resolvable:$true] %s62_s15 }
   0xc   :  { %68 = dma.hbm_to_vmem [thread:$0]  %s61_s13, 1024, %s63_s15, [#allocation6], %s993_s25, %s993_s25, %s994_s26  }
   0xd   :  { %s77_s19 = sshll.u32 %s999_s18, 4  ;;  %s78_s19 = int_to_ptr.vmem [resolvable:$true] %s77_s19 }
   0xe   :  { %83 = dma.hbm_to_vmem [thread:$0]  %s76_s17, 1024, %s78_s19, [#allocation9], %s993_s25, %s993_s25, %s994_s26  }
   0xf   :  { %984 = dma.done.wait [#allocation3], 2048  }
  0x10   :  { %985 = vsyncadd [#allocation3], 4294965248 }
  0x11   :  { %986 = dma.done.wait [#allocation6], 3072  }
  0x12   :  { %987 = vsyncadd [#allocation6], 4294964224 }
  0x13   :  { %988 = dma.done.wait [#allocation9], 1024  }
  0x14   :  { %989 = vsyncadd [#allocation9], 4294966272  ;;  %vm114_vm0 = vcmask 1041408   ;;  %v105_v0 = vld [vmem:[%s1098_s1] sm:$0x3]  ;;  %vm110_vm1 = vcmask 31744  }
  0x15   :  { %v103_v1 = vld [vmem:[%s1097_s0] sm:$0xff]  ;;  %v669_v2 = vld [vmem:[#allocation2 + $0x70] sm:$0xf]  ;;  %v116_v3 = vsel %vm114_vm0, %v105_v0, 0  ;;  %v818_v5 = vld [vmem:[#allocation2 + $0x74] sm:$0xf0] }
  0x16   :  { %v104_v4 = vpack.c.bf16 %v103_v1, %v103_v1  ;;  %v817_v6 = vld [vmem:[#allocation2 + $0x74] sm:$0xf]  ;;  %125 = vmatpush.bf16.msra.mxu0 %v116_v3  ;;  %v670_v7 = vor.u32 %v818_v5, %v669_v2  ;;  %v671_v8 = vld [vmem:[#allocation2 + $0x78] sm:$0xf0]  ;;  %v661_v9 = vld [vmem:[#allocation2 + $0x60] sm:$0xf] }
  0x17   :  { %v816_v10 = vld [vmem:[#allocation2 + $0x64] sm:$0xf0]  ;;  %v674_v11 = vor.u32 %v817_v6, %v671_v8  ;;  %v815_v12 = vld [vmem:[#allocation2 + $0x64] sm:$0xf]  ;;  %v663_v13 = vld [vmem:[#allocation2 + $0x68] sm:$0xf0] }
  0x18   :  { %235 = vmatpush.bf16.msra.mxu1 %v670_v7  ;;  %v662_v14 = vor.u32 %v816_v10, %v661_v9  ;;  %v666_v15 = vor.u32 %v815_v12, %v663_v13  ;;  %v653_v16 = vld [vmem:[#allocation2 + $0x50] sm:$0xf]  ;;  %v814_v17 = vld [vmem:[#allocation2 + $0x54] sm:$0xf0]  ;;  %v813_v18 = vld [vmem:[#allocation2 + $0x54] sm:$0xf] }
  0x19   :  { %610 = vmatmul.msk.bf16.vlgmr.msra.gmra.mxu0 %vm110_vm1, %v104_v4  ;;  %248 = vmatpush.bf16.msra.mxu2 %v674_v11  ;;  %v655_v19 = vld [vmem:[#allocation2 + $0x58] sm:$0xf0]  ;;  %v654_v20 = vor.u32 %v814_v17, %v653_v16  ;;  %v645_v21 = vld [vmem:[#allocation2 + $0x40] sm:$0xf]  ;;  %v812_v22 = vld [vmem:[#allocation2 + $0x44] sm:$0xf0] }
  0x1a   :  { %v658_v23 = vor.u32 %v813_v18, %v655_v19  ;;  %v811_v24 = vld [vmem:[#allocation2 + $0x44] sm:$0xf]  ;;  %v647_v25 = vld [vmem:[#allocation2 + $0x48] sm:$0xf0]  ;;  %v646_v26 = vor.u32 %v812_v22, %v645_v21  ;;  %v637_v28 = vld [vmem:[#allocation2 + $0x30] sm:$0xf] }
  0x1b   :  { %v650_v27 = vor.u32 %v811_v24, %v647_v25  ;;  %v810_v29 = vld [vmem:[#allocation2 + $0x34] sm:$0xf0]  ;;  %v809_v30 = vld [vmem:[#allocation2 + $0x34] sm:$0xf]  ;;  %v639_v31 = vld [vmem:[#allocation2 + $0x38] sm:$0xf0] }
  0x1c   :  { %236 = vmatpush.bf16.msra.mxu1 %v662_v14  ;;  %v638_v32 = vor.u32 %v810_v29, %v637_v28  ;;  %v642_v33 = vor.u32 %v809_v30, %v639_v31  ;;  %v629_v34 = vld [vmem:[#allocation2 + $0x20] sm:$0xf]  ;;  %v808_v35 = vld [vmem:[#allocation2 + $0x24] sm:$0xf0]  ;;  %v807_v36 = vld [vmem:[#allocation2 + $0x24] sm:$0xf] }
  0x1d   :  { %249 = vmatpush.bf16.msra.mxu2 %v666_v15  ;;  %v631_v37 = vld [vmem:[#allocation2 + $0x28] sm:$0xf0]  ;;  %v630_v38 = vor.u32 %v808_v35, %v629_v34  ;;  %v621_v40 = vld [vmem:[#allocation2 + $0x10] sm:$0xf]  ;;  %v806_v41 = vld [vmem:[#allocation2 + $0x14] sm:$0xf0] }
  0x1e   :  { %v634_v39 = vor.u32 %v807_v36, %v631_v37  ;;  %v805_v42 = vld [vmem:[#allocation2 + $0x14] sm:$0xf]  ;;  %v622_v43 = vor.u32 %v806_v41, %v621_v40  ;;  %v623_v44 = vld [vmem:[#allocation2 + $0x18] sm:$0xf0]  ;;  %v613_v46 = vld [vmem:[#allocation2] sm:$0xf] }
  0x1f   :  { %v626_v45 = vor.u32 %v805_v42, %v623_v44  ;;  %v804_v47 = vld [vmem:[#allocation2 + $0x4] sm:$0xf0]  ;;  %v803_v48 = vld [vmem:[#allocation2 + $0x4] sm:$0xf]  ;;  %v615_v50 = vld [vmem:[#allocation2 + $0x8] sm:$0xf0] }
  0x20   :  { %237 = vmatpush.bf16.msra.mxu1 %v654_v20  ;;  %v614_v49 = vor.u32 %v804_v47, %v613_v46  ;;  %v618_v51 = vor.u32 %v803_v48, %v615_v50  ;;  %v826_v52 = vld [vmem:[#allocation5 + $0x38] sm:$0xff]  ;;  %v825_v54 = vld [vmem:[#allocation5 + $0x30] sm:$0xff]  ;;  %v824_v56 = vld [vmem:[#allocation5 + $0x28] sm:$0xff]  ;;  %s1000_s27 = smov [#allocation10]   ;;  %s598_s5 = sshll.u32 %s1108_s11, 4  ;;  %s599_s5 = int_to_ptr.hbm [resolvable:$true] %s598_s5 }
  0x21   :  { %250 = vmatpush.bf16.msra.mxu2 %v658_v23  ;;  %v834_v53 = vld [vmem:[#allocation5 + $0x78] sm:$0xff]  ;;  %397 = vmatpush.bf16.msra.mxu3 %v826_v52  ;;  %v833_v55 = vld [vmem:[#allocation5 + $0x70] sm:$0xff]  ;;  %v832_v57 = vld [vmem:[#allocation5 + $0x68] sm:$0xff]  ;;  %s596_s28 = sshll.u32 %s1000_s27, 4  ;;  %s597_s28 = int_to_ptr.vmem [resolvable:$true] %s596_s28 }
  0x22   :  { %410 = vmatpush.bf16.msrb.mxu0 %v834_v53  ;;  %v823_v58 = vld [vmem:[#allocation5 + $0x20] sm:$0xff]  ;;  %v822_v60 = vld [vmem:[#allocation5 + $0x18] sm:$0xff]  ;;  %v821_v62 = vld [vmem:[#allocation5 + $0x10] sm:$0xff] }
  0x23   :  { %v831_v59 = vld [vmem:[#allocation5 + $0x60] sm:$0xff]  ;;  %v830_v61 = vld [vmem:[#allocation5 + $0x58] sm:$0xff]  ;;  %v820_v5 = vld [vmem:[#allocation5 + $0x8] sm:$0xff] }
  0x24   :  { %238 = vmatpush.bf16.msra.mxu1 %v646_v26  ;;  %v860_v63 = vld [vmem:[%s1099_s2] ss:$0 sm:$0xff]  ;;  %v829_v6 = vld [vmem:[#allocation5 + $0x50] sm:$0xff]  ;;  %v828_v8 = vld [vmem:[#allocation5 + $0x48] sm:$0xff] }
  0x25   :  { %251 = vmatpush.bf16.msra.mxu2 %v650_v27  ;;  %398 = vmatpush.bf16.msra.mxu3 %v825_v54  ;;  %v819_v7 = vld [vmem:[#allocation5] sm:$0xff]  ;;  %v842_v10 = vld [vmem:[#allocation7 + $0x38] sm:$0xff]  ;;  %v841_v11 = vld [vmem:[#allocation7 + $0x30] sm:$0xff] }
  0x26   :  { %411 = vmatpush.bf16.msrb.mxu0 %v833_v55  ;;  %v827_v9 = vld [vmem:[#allocation5 + $0x40] sm:$0xff]  ;;  %v840_v12 = vld [vmem:[#allocation7 + $0x28] sm:$0xff]  ;;  %v838_v15 = vld [vmem:[#allocation7 + $0x18] sm:$0xff] }
  0x27   :  { %v839_v13 = vld [vmem:[#allocation7 + $0x20] sm:$0xff]  ;;  %v837_v18 = vld [vmem:[#allocation7 + $0x10] sm:$0xff]  ;;  %v836_v29 = vld [vmem:[#allocation7 + $0x8] sm:$0xff] }
  0x28   :  { %239 = vmatpush.bf16.msra.mxu1 %v638_v32  ;;  %v149_v14 = vld [vmem:[%s1101_s4] sm:$0x3]  ;;  %v850_v31 = vld [vmem:[#allocation8 + $0x38] sm:$0xff]  ;;  %v849_v32 = vld [vmem:[#allocation8 + $0x30] sm:$0xff] }
  0x29   :  { %252 = vmatpush.bf16.msra.mxu2 %v642_v33  ;;  %399 = vmatpush.bf16.msra.mxu3 %v824_v56  ;;  %v151_v16 = vperm.slane %v149_v14, 0  ;;  %v152_v21 = vperm.slane %v149_v14, 1  ;;  %v835_v30 = vld [vmem:[#allocation7] sm:$0xff]  ;;  %v848_v33 = vld [vmem:[#allocation8 + $0x28] sm:$0xff]  ;;  %v846_v35 = vld [vmem:[#allocation8 + $0x18] sm:$0xff] }
  0x2a   :  { %412 = vmatpush.bf16.msrb.mxu0 %v832_v57  ;;  %v847_v34 = vld [vmem:[#allocation8 + $0x20] sm:$0xff]  ;;  %v845_v36 = vld [vmem:[#allocation8 + $0x10] sm:$0xff]  ;;  %v844_v46 = vld [vmem:[#allocation8 + $0x8] sm:$0xff] }
  0x2b   :  { %v861_v37 = vld [vmem:[%s1103_s6] ss:$0 sm:$0xff] }
  0x2c   :  { %240 = vmatpush.bf16.msra.mxu1 %v630_v38  ;;  %v843_v47 = vld [vmem:[#allocation8] sm:$0xff] }
  0x2d   :  { %253 = vmatpush.bf16.msra.mxu2 %v634_v39  ;;  %400 = vmatpush.bf16.msra.mxu3 %v823_v58  ;;  %v862_v48 = vld [vmem:[%s1105_s8] ss:$0 sm:$0xff] }
  0x2e   :  { %413 = vmatpush.bf16.msrb.mxu0 %v831_v59  ;;  %v863_v54 = vld [vmem:[%s1107_s10] ss:$0 sm:$0xff] }
  0x30   :  { %241 = vmatpush.bf16.msra.mxu1 %v622_v43 }
  0x31   :  { %254 = vmatpush.bf16.msra.mxu2 %v626_v45  ;;  %401 = vmatpush.bf16.msra.mxu3 %v822_v60 }
  0x32   :  { %414 = vmatpush.bf16.msrb.mxu0 %v830_v61 }
  0x34   :  { %242 = vmatpush.bf16.msra.mxu1 %v614_v49 }
  0x35   :  { %255 = vmatpush.bf16.msra.mxu2 %v618_v51  ;;  %402 = vmatpush.bf16.msra.mxu3 %v821_v62 }
  0x36   :  { %415 = vmatpush.bf16.msrb.mxu0 %v829_v6 }
  0x38   :  { %493 = vmatpush.bf16.msrb.mxu1 %v842_v10 }
  0x39   :  { %403 = vmatpush.bf16.msra.mxu3 %v820_v5  ;;  %576 = vmatpush.bf16.msrb.mxu2 %v850_v31 }
  0x3a   :  { %416 = vmatpush.bf16.msrb.mxu0 %v828_v8 }
  0x3c   :  { %494 = vmatpush.bf16.msrb.mxu1 %v841_v11 }
  0x3d   :  { %404 = vmatpush.bf16.msra.mxu3 %v819_v7  ;;  %577 = vmatpush.bf16.msrb.mxu2 %v849_v32 }
  0x3e   :  { %417 = vmatpush.bf16.msrb.mxu0 %v827_v9 }
  0x40   :  { %495 = vmatpush.bf16.msrb.mxu1 %v840_v12 }
  0x41   :  { %578 = vmatpush.bf16.msrb.mxu2 %v848_v33 }
  0x44   :  { %496 = vmatpush.bf16.msrb.mxu1 %v839_v13 }
  0x45   :  { %579 = vmatpush.bf16.msrb.mxu2 %v847_v34 }
  0x48   :  { %497 = vmatpush.bf16.msrb.mxu1 %v838_v15 }
  0x49   :  { %580 = vmatpush.bf16.msrb.mxu2 %v846_v35 }
  0x4c   :  { %498 = vmatpush.bf16.msrb.mxu1 %v837_v18 }
  0x4d   :  { %581 = vmatpush.bf16.msrb.mxu2 %v845_v36 }
  0x50   :  { %499 = vmatpush.bf16.msrb.mxu1 %v836_v29 }
  0x51   :  { %582 = vmatpush.bf16.msrb.mxu2 %v844_v46 }
  0x54   :  { %500 = vmatpush.bf16.msrb.mxu1 %v835_v30 }
  0x55   :  { %583 = vmatpush.bf16.msrb.mxu2 %v843_v47 }
  0x96   :  { %v127_v0 = vpop.f32.mrf.mxu0 }
  0x97   :  { %v128_v1 = vadd.f32 %v860_v63, %v127_v0 }
  0x99   :  { %v131_v2 = vmax.f32 %v128_v1, 0.0 }
  0x9b   :  { %v132_v3 = vpack.c.bf16 %v131_v2, %v131_v2 }
  0x9d   :  { %243 = vmatmul.bf16.vlgmr.msra.gmra.mxu1 %v132_v3  ;;  %256 = vmatmul.bf16.vlgmr.msra.gmra.mxu2 %v132_v3 }
  0x9e   :  { %v129_v4 = vpop.f32.mrf.mxu0 }
 0x11a   :  { %v244_v17 = vpop.f32.mrf.mxu1 }
 0x11b   :  { %v245_v19 = vadd.f32 %v244_v17, %v151_v16 }
 0x11d   :  { %v261_v20 = vmax.f32 %v245_v19, 0.0 }
 0x11f   :  { %v263_v22 = vpack.c.bf16 %v261_v20, %v261_v20 }
 0x120   :  { %v257_v23 = vpop.f32.mrf.mxu2 }
 0x121   :  { %v258_v24 = vadd.f32 %v257_v23, %v152_v21  ;;  %405 = vmatmul.bf16.vlgmr.msra.gmra.mxu3 %v263_v22 }
 0x122   :  { %v246_v25 = vpop.f32.mrf.mxu1 }
 0x123   :  { %v262_v26 = vmax.f32 %v258_v24, 0.0 }
 0x125   :  { %v264_v27 = vpack.c.bf16 %v262_v26, %v262_v26 }
 0x127   :  { %418 = vmatmul.bf16.vlgmr.msrb.gmra.mxu0 %v264_v27 }
 0x128   :  { %v259_v28 = vpop.f32.mrf.mxu2 }
 0x1a4   :  { %v406_v38 = vpop.f32.mrf.mxu3  ;;  %v419_v39 = vpop.f32.mrf.mxu0 }
 0x1a5   :  { %v407_v40 = vadd.f32 %v861_v37, %v406_v38 }
 0x1a7   :  { %v420_v41 = vadd.f32 %v419_v39, %v407_v40 }
 0x1a9   :  { %v423_v42 = vmax.f32 %v420_v41, 0.0 }
 0x1ab   :  { %v424_v43 = vpack.c.bf16 %v423_v42, %v423_v42 }
 0x1ac   :  { %v408_v44 = vpop.f32.mrf.mxu3  ;;  %v421_v45 = vpop.f32.mrf.mxu0 }
 0x1ad   :  { %501 = vmatmul.bf16.vlgmr.msrb.gmra.mxu1 %v424_v43 }
 0x22a   :  { %v502_v49 = vpop.f32.mrf.mxu1 }
 0x22b   :  { %v503_v50 = vadd.f32 %v862_v48, %v502_v49 }
 0x22d   :  { %v506_v51 = vmax.f32 %v503_v50, 0.0 }
 0x22f   :  { %v507_v52 = vpack.c.bf16 %v506_v51, %v506_v51 }
 0x231   :  { %584 = vmatmul.bf16.vlgmr.msrb.gmra.mxu2 %v507_v52 }
 0x232   :  { %v504_v53 = vpop.f32.mrf.mxu1 }
 0x2b4   :  { %v585_v55 = vpop.f32.mrf.mxu2 }
 0x2b5   :  { %v586_v56 = vadd.f32 %v863_v54, %v585_v55 }
 0x2b7   :  { %v589_v57 = vpack.c.bf16 %v586_v56, %v586_v56 }
 0x2b9   :  { %590 = vst [vmem:[#allocation10] sm:$0xf] %v589_v57 }
 0x2ba   :  { %601 = dma.vmem_to_hbm [thread:$0]  %s597_s28, 64, %s599_s5, [#allocation4]  }
 0x2bc   :  { %v587_v58 = vpop.f32.mrf.mxu2 }
 0x2bd   :  { %990 = dma.done.wait [#allocation4], 64  }
 0x2be   :  { %991 = vsyncadd [#allocation4], 4294967232 }
 0x2bf   :  { %606 = vsyncpa [#allocation3], 1 }
 0x2c0   :  { %607 = vsyncpa [#allocation6], 1 }
 0x2c1   :  { %608 = vsyncpa [#allocation9], 1 }
 0x2c2   :  { %609 = vsyncpa [#allocation4], 1 }

</bundles_post_ra>
